<compile_context>
chip_gen: v6e
topology: v6e:2x2x1
jax: 0.10.0
libtpu: 0.0.40
codegen_flags: <defaults>
</compile_context>

<pallas_src>
import math

import jax
import jax.numpy as jnp
from jax.experimental import pallas as pl
from jax.experimental.pallas import tpu as pltpu


def _make_kernel(beta):
    half_beta = 0.5 * float(beta)

    def kernel(x_ref, slope_ref, o_ref):
        x = x_ref[...].astype(jnp.float32)       # (tm, tn)
        s = slope_ref[...].astype(jnp.float32)   # (1, tn) broadcast over rows
        z = s * x
        # beta * sigmoid(z) == half_beta * tanh(0.5 * z) + half_beta
        # -> one EUP transcendental, no full-precision divide.
        y = half_beta * jnp.tanh(0.5 * z) + half_beta
        o_ref[...] = y.astype(o_ref.dtype)

    return kernel


def _vmem_budget():
    """Per-tile byte budget + scoped-VMEM limit, derived from the chip."""
    try:
        cap = pltpu.get_tpu_info().vmem_capacity_bytes
    except Exception:  # interpret mode / unknown chip -> conservative default
        cap = 64 * 1024 * 1024
    # x + out are each double-buffered => 4 live tile buffers; keep them well
    # under VMEM capacity (v7x: 64 MiB/TC, v5e/v6e: 128 MiB).
    tile = min(4 * 1024 * 1024, max(512 * 1024, cap // 24))
    limit = min(48 * 1024 * 1024, max(16 * 1024 * 1024, 6 * tile + (2 << 20)))
    return tile, limit


def learnable_sigmoid(x, slope, beta=1.0):
    """x: [..., F], slope: [F]. Returns beta * sigmoid(slope * x)."""
    F = x.shape[-1]
    assert slope.shape == (F,), (slope.shape, F)
    lead = x.shape[:-1]
    R = 1
    for d in lead:
        R *= d
    if R == 0:
        return jnp.zeros_like(x)

    itemsize = jnp.dtype(x.dtype).itemsize
    target_tile_bytes, vmem_limit = _vmem_budget()

    x2 = x.reshape(R, F)
    slope_row = slope.reshape(1, F)

    # ---- lane-dense folding: make the output last dim a multiple of 128 ----
    Rw, Fw = R, F
    if F % 128 != 0:
        k = 128 // math.gcd(F, 128)     # = lcm(F, 128) / F
        if k > 1 and R % k == 0:
            Rw, Fw = R // k, F * k
            x2 = x2.reshape(Rw, Fw)                  # row-major, free reshape
            slope_row = jnp.tile(slope_row, (1, k))  # periodic slope pattern

    # ---- tile selection -----------------------------------------------------
    # Prefer full feature width: contiguous HBM slabs, slope block constant.
    if Fw <= 128 or 8 * Fw * itemsize <= target_tile_bytes:
        tn = Fw
    else:
        tn = (target_tile_bytes // (8 * itemsize)) // 128 * 128
        tn = max(128, min(tn, (Fw // 128) * 128))

    tm = target_tile_bytes // max(1, tn * itemsize)
    tm = max(8, (tm // 8) * 8)
    if tm >= Rw:
        tm = Rw

    # ---- megacore: guarantee >= 2 grid steps for medium/large inputs --------
    total_bytes = Rw * Fw * itemsize
    if pl.cdiv(Rw, tm) == 1 and pl.cdiv(Fw, tn) == 1 and total_bytes > (2 << 20):
        if Rw >= 16:
            tm = max(8, ((Rw // 2 + 7) // 8) * 8)
            if tm >= Rw:
                tm = max(8, (Rw // 2) // 8 * 8)
        elif Fw >= 256:
            tn = max(128, ((Fw // 2 + 127) // 128) * 128)
            if tn >= Fw:
                tn = max(128, (Fw // 2) // 128 * 128)

    grid = (pl.cdiv(Rw, tm), pl.cdiv(Fw, tn))

    out = pl.pallas_call(
        _make_kernel(beta),
        out_shape=jax.ShapeDtypeStruct((Rw, Fw), x.dtype),
        grid_spec=pl.GridSpec(
            grid=grid,
            in_specs=[
                pl.BlockSpec((tm, tn), lambda i, j: (i, j)),
                pl.BlockSpec((1, tn), lambda i, j: (0, j)),
            ],
            out_specs=pl.BlockSpec((tm, tn), lambda i, j: (i, j)),
        ),
        compiler_params=pltpu.CompilerParams(
            dimension_semantics=("parallel", "parallel"),
            vmem_limit_bytes=int(vmem_limit)),
        cost_estimate=pl.CostEstimate(
            flops=2 * R * F,
            transcendentals=R * F,
            bytes_accessed=2 * R * F * itemsize + F * itemsize),
    )(x2, slope_row)

    return out.reshape(*lead, F)


if __name__ == "__main__":
    key = jax.random.PRNGKey(0)
    kx1, kx2, kx3 = jax.random.split(key, 3)

    # Case 1: narrow feature dim, divisor of 128 (fold k=4 -> 128 lanes).
    B, T, F = 2, 8, 32
    x1 = jax.random.normal(kx1, (B, T, F), dtype=jnp.float32)
    slope1 = jnp.ones((F,), jnp.float32) + 0.01 * jnp.arange(F, dtype=jnp.float32)
    beta1 = 1.0
    y1 = jax.block_until_ready(learnable_sigmoid(x1, slope1, beta1))
    ref1 = beta1 * jax.nn.sigmoid(slope1 * x1)
    assert y1.shape == x1.shape
    assert jnp.allclose(y1, ref1, atol=1e-5, rtol=1e-5)

    # Case 2: F=96 (not a divisor of 128) -> generalized lcm fold, k=4 -> 384
    # lanes; beta != 1.
    F2 = 96
    x2 = jax.random.normal(kx2, (2, 8, F2), dtype=jnp.float32)
    slope2 = jnp.ones((F2,), jnp.float32) + 0.02 * jnp.arange(F2, dtype=jnp.float32)
    beta2 = 2.0
    y2 = jax.block_until_ready(learnable_sigmoid(x2, slope2, beta2))
    ref2 = beta2 * jax.nn.sigmoid(slope2 * x2)
    assert y2.shape == x2.shape
    assert jnp.allclose(y2, ref2, atol=1e-5, rtol=1e-5)

    # Case 3: row count not divisible by the fold factor -> unfolded fallback
    # path (masked stores, still correct).
    x3 = jax.random.normal(kx3, (3, 5, F2), dtype=jnp.float32)
    beta3 = 0.5
    y3 = jax.block_until_ready(learnable_sigmoid(x3, slope2, beta3))
    ref3 = beta3 * jax.nn.sigmoid(slope2 * x3)
    assert y3.shape == x3.shape
    assert jnp.allclose(y3, ref3, atol=1e-5, rtol=1e-5)

    print("KERNEL_OK")
</pallas_src>

<mosaic_0001>
module attributes {stable_mosaic.version = 11 : i64} {
  func.func @kernel(%arg0: i32, %arg1: i32, %arg2: memref<4x128xf32, #tpu.memory_space<vmem>>, %arg3: memref<1x128xf32, #tpu.memory_space<vmem>>, %arg4: memref<4x128xf32, #tpu.memory_space<vmem>>) attributes {dimension_semantics = [#tpu.dimension_semantics<parallel>, #tpu.dimension_semantics<parallel>], iteration_bounds = array<i64: 1, 1>, scalar_prefetch = 0 : i64, scratch_operands = 0 : i64, tpu.core_type = #tpu.core_type<tc>, window_params = [{transform_indices = @transform_0, window_bounds = array<i64: 4, 128>}, {transform_indices = @transform_1, window_bounds = array<i64: 1, 128>}, {transform_indices = @transform_2, window_bounds = array<i64: 4, 128>}]} {
    %c0 = arith.constant 0 : index
    %c0_0 = arith.constant 0 : index
    %0 = vector.load %arg2[%c0, %c0_0] : memref<4x128xf32, #tpu.memory_space<vmem>>, vector<4x128xf32>
    %c0_1 = arith.constant 0 : index
    %c0_2 = arith.constant 0 : index
    %1 = vector.load %arg3[%c0_1, %c0_2] : memref<1x128xf32, #tpu.memory_space<vmem>>, vector<1x128xf32>
    %2 = vector.broadcast %1 : vector<1x128xf32> to vector<4x128xf32>
    %3 = arith.mulf %2, %0 : vector<4x128xf32>
    %cst = arith.constant 5.000000e-01 : f32
    %4 = vector.broadcast %cst : f32 to vector<4x128xf32>
    %5 = arith.mulf %4, %3 : vector<4x128xf32>
    %6 = math.tanh %5 : vector<4x128xf32>
    %cst_3 = arith.constant 5.000000e-01 : f32
    %7 = vector.broadcast %cst_3 : f32 to vector<4x128xf32>
    %8 = arith.mulf %7, %6 : vector<4x128xf32>
    %cst_4 = arith.constant 5.000000e-01 : f32
    %9 = vector.broadcast %cst_4 : f32 to vector<4x128xf32>
    %10 = arith.addf %8, %9 : vector<4x128xf32>
    %c0_5 = arith.constant 0 : index
    %c0_6 = arith.constant 0 : index
    %11 = vector.load %arg4[%c0_5, %c0_6] : memref<4x128xf32, #tpu.memory_space<vmem>>, vector<4x128xf32>
    tpu.vector_store %arg4[%c0_5, %c0_6], %10 {strides = array<i32>} : memref<4x128xf32, #tpu.memory_space<vmem>>, vector<4x128xf32>,
    return
  }
  func.func @transform_0(%arg0: i32, %arg1: i32) -> (i32, i32) {
    %c0_i32 = arith.constant 0 : i32
    return %arg0, %arg1 : i32, i32
  }
  func.func @transform_1(%arg0: i32, %arg1: i32) -> (i32, i32) {
    %c0_i32 = arith.constant 0 : i32
    %c0_i32_0 = arith.constant 0 : i32
    return %c0_i32, %arg1 : i32, i32
  }
  func.func @transform_2(%arg0: i32, %arg1: i32) -> (i32, i32) {
    %c0_i32 = arith.constant 0 : i32
    return %arg0, %arg1 : i32, i32
  }
}

</mosaic_0001>

<bundles_post_ra>
// kernel: tpu_custom_call.1
= control target key start
LH: loop header
LB: loop body
LE: loop exit
PB: predicated region body
PF: predicated region fallthrough
CT: control target
= control target key end

     0   :  { %7 = vsyncpa [#allocation3], 0  ;;  %s128_s0 = inlined_call_operand.hbm [shape: f32[4,128], index: 0, kind: input, shape index: {}]   ;;  %s129_s1 = inlined_call_operand.vmem [shape: f32[1,128], index: 1, kind: input, shape index: {}]   ;;  %s130_s2 = inlined_call_operand.hbm [shape: f32[4,128], index: 2, kind: output, shape index: {}]  }
   0x1   :  { %8 = vsyncpa [#allocation4], 0  ;;  %s102_s9 = smov [#allocation2]  }
   0x2   :  { %s15_s10 = sshll.u32 %s102_s9, 4  ;;  %s16_s10 = int_to_ptr.vmem [resolvable:$true] %s15_s10 }
   0x3   :  { %s66_s11 = scalar_lea.vmem %s16_s10, 64  ;;  %p71_p1 = scmp.lt.s32.totalorder %s16_s10, %s16_s10 }
   0x4   :  { %p67_p0 = scmp.ne.s32.totalorder %s16_s10, %s66_s11  ;;  %p72_p2 = scmp.lt.s32.totalorder %s66_s11, %s66_s11 }
   0x6   :  { %p73_p3 = por %p72_p2, %p71_p1 }
   0x8   :  { %p74_p4 = pnand %p73_p3, %p67_p0 }
   0xa   :  { %77 = shalt.err (!%p74_p4)
}
   0xb   :  { %18 = dma.hbm_to_vmem [thread:$0]  %s128_s0, 64, %s16_s10, [#allocation3]  }
   0xc   :  { %98 = dma.done.wait [#allocation3], 64  }
   0xd   :  { %99 = vsyncadd [#allocation3], 4294967232  ;;  %v24_v0 = vld [vmem:[#allocation2] sm:$0xf]  ;;  %s103_s16 = smov [#allocation5]  }
   0xe   :  { %v53_v1 = vld [vmem:[%s129_s1] ss:$0 sm:$0xff]  ;;  %s44_s17 = sshll.u32 %s103_s16, 4  ;;  %s45_s17 = int_to_ptr.vmem [resolvable:$true] %s44_s17 }
   0xf   :  { %v32_v2 = vmul.f32 %v53_v1, %v24_v0  ;;  %s78_s18 = scalar_lea.vmem %s45_s17, 64  ;;  %p83_p6 = scmp.lt.s32.totalorder %s45_s17, %s45_s17 }
  0x10   :  { %p79_p5 = scmp.ne.s32.totalorder %s45_s17, %s78_s18  ;;  %p84_p7 = scmp.lt.s32.totalorder %s78_s18, %s78_s18 }
  0x11   :  { %v33_v3 = vmul.f32 0.5, %v32_v2 }
  0x12   :  { %p85_p8 = por %p84_p7, %p83_p6 }
  0x13   :  { %56 = vtanh.f32 %v33_v3 }
  0x14   :  { %p86_p9 = pnand %p85_p8, %p79_p5 }
  0x20   :  { %v57_v4 = vpop.eup %56 }
  0x21   :  { %v35_v5 = vmul.f32 0.5, %v57_v4 }
  0x23   :  { %v36_v6 = vadd.f32 0.5, %v35_v5 }
  0x25   :  { %37 = vst [vmem:[#allocation5] sm:$0xf] %v36_v6 }
  0x26   :  { %89 = shalt.err (!%p86_p9)
}
  0x27   :  { %47 = dma.vmem_to_hbm [thread:$0]  %s45_s17, 64, %s130_s2, [#allocation4]  }
  0x28   :  { %100 = dma.done.wait [#allocation4], 64  }
  0x29   :  { %101 = vsyncadd [#allocation4], 4294967232 }
  0x2a   :  { %51 = vsyncpa [#allocation3], 1 }
  0x2b   :  { %52 = vsyncpa [#allocation4], 1 }

</bundles_post_ra>
